<compile_context>
chip_gen: v7x
topology: tpu7x:2x2x1
jax: 0.10.0
libtpu: 0.0.40
codegen_flags: <defaults>
</compile_context>

<pallas_src>
import jax
import jax.numpy as jnp
import numpy as np
from jax.experimental import pallas as pl
from jax.experimental.pallas import tpu as pltpu


def _round_up(n, m):
    return ((n + m - 1) // m) * m


def _sigmoid(x):
    # 1 / (1 + e^-x): exp and the approximate reciprocal both issue on the EUP
    # slot, keeping VALU slots free for the adds around them.
    return pl.reciprocal(1.0 + jnp.exp(-x), approx=True)


def mlp_kernel(x_ref, w1_ref, b1_ref, w2_ref, b2_ref, w3_ref, b3_ref, o_ref):
    # Lane-dense transposed layout: batch on the lane (last) axis.
    #   x_ref : (8, TB)   activation tile (x^T), streamed per grid step
    #   wN    : (out, in) PyTorch orientation, VMEM-resident across the grid
    #   bN    : (out, TB) bias pre-broadcast once in the wrapper, VMEM-resident
    xT = x_ref[...]                                                      # (8, TB)

    h1 = jnp.dot(w1_ref[...], xT, preferred_element_type=jnp.float32) + b1_ref[...]
    h1 = _sigmoid(h1)                                                    # (6, TB)

    h2 = jnp.dot(w2_ref[...], h1, preferred_element_type=jnp.float32) + b2_ref[...]
    h2 = _sigmoid(h2)                                                    # (4, TB)

    y = jnp.dot(w3_ref[...], h2, preferred_element_type=jnp.float32) + b3_ref[...]
    o_ref[...] = _sigmoid(y)                                             # (1, TB)


def mlp_forward(x, params, *, tile_b=2048):
    """x: (B, 8) float32.  params: PyTorch-orientation wN:(out,in), bN:(out,)."""
    w1, b1 = params["w1"], params["b1"]
    w2, b2 = params["w2"], params["b2"]
    w3, b3 = params["w3"], params["b3"]

    B = x.shape[0]
    # Batch tile on the lane axis: multiple of 128, capped at tile_b.
    tb = min(tile_b, _round_up(max(B, 1), 128))
    Bp = _round_up(B, tb)

    xT = jnp.pad(x.astype(jnp.float32).T, ((0, 0), (0, Bp - B)))          # (8, Bp)
    # Pre-broadcast biases once (outside the kernel / per-tile loop).
    b1b = jnp.broadcast_to(b1.reshape(6, 1), (6, tb))
    b2b = jnp.broadcast_to(b2.reshape(4, 1), (4, tb))
    b3b = jnp.broadcast_to(b3.reshape(1, 1), (1, tb))

    const = lambda i: (0, 0)  # weights / biases: same block every step -> VMEM-resident
    yT = pl.pallas_call(
        mlp_kernel,
        out_shape=jax.ShapeDtypeStruct((1, Bp), jnp.float32),
        grid=(Bp // tb,),
        in_specs=[
            pl.BlockSpec((8, tb), lambda i: (0, i)),   # activation tiles stream
            pl.BlockSpec((6, 8), const),
            pl.BlockSpec((6, tb), const),
            pl.BlockSpec((4, 6), const),
            pl.BlockSpec((4, tb), const),
            pl.BlockSpec((1, 4), const),
            pl.BlockSpec((1, tb), const),
        ],
        out_specs=pl.BlockSpec((1, tb), lambda i: (0, i)),
        compiler_params=pltpu.CompilerParams(
            dimension_semantics=("parallel",)),        # megacore-shard batch tiles (v7x)
    )(xT, w1, b1b, w2, b2b, w3, b3b)

    return yT[:, :B].T                                                    # (B, 1)


def init_params(key):
    """nn.Linear-style init: U(-1/sqrt(fan_in), 1/sqrt(fan_in)); W stored (out, in)."""
    dims = [(8, 6), (6, 4), (4, 1)]
    params = {}
    keys = jax.random.split(key, 2 * len(dims))
    for i, (din, dout) in enumerate(dims):
        bound = 1.0 / np.sqrt(din)
        params[f"w{i + 1}"] = jax.random.uniform(
            keys[2 * i], (dout, din), jnp.float32, -bound, bound)
        params[f"b{i + 1}"] = jax.random.uniform(
            keys[2 * i + 1], (dout,), jnp.float32, -bound, bound)
    return params


def mlp_reference(x, params):
    h1 = jax.nn.sigmoid(x @ params["w1"].T + params["b1"])
    h2 = jax.nn.sigmoid(h1 @ params["w2"].T + params["b2"])
    return jax.nn.sigmoid(h2 @ params["w3"].T + params["b3"])


if __name__ == "__main__":
    key = jax.random.PRNGKey(0)
    k_params, k_x1, k_x2 = jax.random.split(key, 3)
    params = init_params(k_params)

    # Small batch with 8 features (the module's forward implies in_features=8).
    x_small = jax.random.normal(k_x1, (2, 8), dtype=jnp.float32)
    y_small = jax.block_until_ready(mlp_forward(x_small, params))
    np.testing.assert_allclose(
        np.asarray(y_small), np.asarray(mlp_reference(x_small, params)),
        rtol=2e-3, atol=2e-3)  # relaxed: EUP approx reciprocal has ~1e-4 rel. error

    # Exercise padding and a multi-tile grid (non-tile-multiple batch).
    x_big = jax.random.normal(k_x2, (1000, 8), dtype=jnp.float32)
    y_big = jax.block_until_ready(mlp_forward(x_big, params, tile_b=512))
    assert y_big.shape == (1000, 1)
    np.testing.assert_allclose(
        np.asarray(y_big), np.asarray(mlp_reference(x_big, params)),
        rtol=2e-3, atol=2e-3)

    print("KERNEL_OK")
</pallas_src>

<mosaic_0001>
module attributes {stable_mosaic.version = 11 : i64} {
  func.func @mlp_kernel(%arg0: i32, %arg1: memref<8x128xf32, #tpu.memory_space<vmem>>, %arg2: memref<6x8xf32, #tpu.memory_space<vmem>>, %arg3: memref<6x128xf32, #tpu.memory_space<vmem>>, %arg4: memref<4x6xf32, #tpu.memory_space<vmem>>, %arg5: memref<4x128xf32, #tpu.memory_space<vmem>>, %arg6: memref<1x4xf32, #tpu.memory_space<vmem>>, %arg7: memref<1x128xf32, #tpu.memory_space<vmem>>, %arg8: memref<1x128xf32, #tpu.memory_space<vmem>>) attributes {dimension_semantics = [#tpu.dimension_semantics<parallel>], iteration_bounds = array<i64: 1>, scalar_prefetch = 0 : i64, scratch_operands = 0 : i64, tpu.core_type = #tpu.core_type<tc>, window_params = [{transform_indices = @transform_0, window_bounds = array<i64: 8, 128>}, {pipeline_mode = #tpu.pipeline_mode<synchronous>, transform_indices = @transform_1, window_bounds = array<i64: 6, 8>}, {pipeline_mode = #tpu.pipeline_mode<synchronous>, transform_indices = @transform_2, window_bounds = array<i64: 6, 128>}, {pipeline_mode = #tpu.pipeline_mode<synchronous>, transform_indices = @transform_3, window_bounds = array<i64: 4, 6>}, {pipeline_mode = #tpu.pipeline_mode<synchronous>, transform_indices = @transform_4, window_bounds = array<i64: 4, 128>}, {pipeline_mode = #tpu.pipeline_mode<synchronous>, transform_indices = @transform_5, window_bounds = array<i64: 1, 4>}, {pipeline_mode = #tpu.pipeline_mode<synchronous>, transform_indices = @transform_6, window_bounds = array<i64: 1, 128>}, {transform_indices = @transform_7, window_bounds = array<i64: 1, 128>}]} {
    %c0 = arith.constant 0 : index
    %c0_0 = arith.constant 0 : index
    %0 = vector.load %arg1[%c0, %c0_0] : memref<8x128xf32, #tpu.memory_space<vmem>>, vector<8x128xf32>
    %c0_1 = arith.constant 0 : index
    %c0_2 = arith.constant 0 : index
    %1 = vector.load %arg2[%c0_1, %c0_2] : memref<6x8xf32, #tpu.memory_space<vmem>>, vector<6x8xf32>
    %cst = arith.constant dense<0.000000e+00> : vector<6x128xf32>
    %2 = tpu.matmul %1, %0, %cst {dimension_numbers = #tpu.dot_dimension_numbers<[1], [0], [0], [1], [0, 0, 1, 1], [], []>} : vector<6x8xf32>, vector<8x128xf32>, vector<6x128xf32> -> vector<6x128xf32>
    %c0_3 = arith.constant 0 : index
    %c0_4 = arith.constant 0 : index
    %3 = vector.load %arg3[%c0_3, %c0_4] : memref<6x128xf32, #tpu.memory_space<vmem>>, vector<6x128xf32>
    %4 = arith.addf %2, %3 : vector<6x128xf32>
    %cst_5 = arith.constant 0.000000e+00 : f32
    %5 = vector.broadcast %cst_5 : f32 to vector<6x128xf32>
    %6 = arith.subf %5, %4 : vector<6x128xf32>
    %7 = math.exp %6 : vector<6x128xf32>
    %cst_6 = arith.constant 1.000000e+00 : f32
    %8 = vector.broadcast %cst_6 : f32 to vector<6x128xf32>
    %9 = arith.addf %8, %7 : vector<6x128xf32>
    %10 = tpu.reciprocal %9 {approx = true} : vector<6x128xf32> -> vector<6x128xf32>
    %c0_7 = arith.constant 0 : index
    %c0_8 = arith.constant 0 : index
    %11 = vector.load %arg4[%c0_7, %c0_8] : memref<4x6xf32, #tpu.memory_space<vmem>>, vector<4x6xf32>
    %cst_9 = arith.constant dense<0.000000e+00> : vector<4x128xf32>
    %12 = tpu.matmul %11, %10, %cst_9 {dimension_numbers = #tpu.dot_dimension_numbers<[1], [0], [0], [1], [0, 0, 1, 1], [], []>} : vector<4x6xf32>, vector<6x128xf32>, vector<4x128xf32> -> vector<4x128xf32>
    %c0_10 = arith.constant 0 : index
    %c0_11 = arith.constant 0 : index
    %13 = vector.load %arg5[%c0_10, %c0_11] : memref<4x128xf32, #tpu.memory_space<vmem>>, vector<4x128xf32>
    %14 = arith.addf %12, %13 : vector<4x128xf32>
    %cst_12 = arith.constant 0.000000e+00 : f32
    %15 = vector.broadcast %cst_12 : f32 to vector<4x128xf32>
    %16 = arith.subf %15, %14 : vector<4x128xf32>
    %17 = math.exp %16 : vector<4x128xf32>
    %cst_13 = arith.constant 1.000000e+00 : f32
    %18 = vector.broadcast %cst_13 : f32 to vector<4x128xf32>
    %19 = arith.addf %18, %17 : vector<4x128xf32>
    %20 = tpu.reciprocal %19 {approx = true} : vector<4x128xf32> -> vector<4x128xf32>
    %c0_14 = arith.constant 0 : index
    %c0_15 = arith.constant 0 : index
    %21 = vector.load %arg6[%c0_14, %c0_15] : memref<1x4xf32, #tpu.memory_space<vmem>>, vector<1x4xf32>
    %cst_16 = arith.constant dense<0.000000e+00> : vector<1x128xf32>
    %22 = tpu.matmul %21, %20, %cst_16 {dimension_numbers = #tpu.dot_dimension_numbers<[1], [0], [0], [1], [0, 0, 1, 1], [], []>} : vector<1x4xf32>, vector<4x128xf32>, vector<1x128xf32> -> vector<1x128xf32>
    %c0_17 = arith.constant 0 : index
    %c0_18 = arith.constant 0 : index
    %23 = vector.load %arg7[%c0_17, %c0_18] : memref<1x128xf32, #tpu.memory_space<vmem>>, vector<1x128xf32>
    %24 = arith.addf %22, %23 : vector<1x128xf32>
    %cst_19 = arith.constant 0.000000e+00 : f32
    %25 = vector.broadcast %cst_19 : f32 to vector<1x128xf32>
    %26 = arith.subf %25, %24 : vector<1x128xf32>
    %27 = math.exp %26 : vector<1x128xf32>
    %cst_20 = arith.constant 1.000000e+00 : f32
    %28 = vector.broadcast %cst_20 : f32 to vector<1x128xf32>
    %29 = arith.addf %28, %27 : vector<1x128xf32>
    %30 = tpu.reciprocal %29 {approx = true} : vector<1x128xf32> -> vector<1x128xf32>
    %c0_21 = arith.constant 0 : index
    %c0_22 = arith.constant 0 : index
    %31 = vector.load %arg8[%c0_21, %c0_22] : memref<1x128xf32, #tpu.memory_space<vmem>>, vector<1x128xf32>
    tpu.vector_store %arg8[%c0_21, %c0_22], %30 {strides = array<i32>} : memref<1x128xf32, #tpu.memory_space<vmem>>, vector<1x128xf32>,
    return
  }
  func.func @transform_0(%arg0: i32) -> (i32, i32) {
    %c0_i32 = arith.constant 0 : i32
    %c0_i32_0 = arith.constant 0 : i32
    return %c0_i32, %arg0 : i32, i32
  }
  func.func @transform_1(%arg0: i32) -> (i32, i32) {
    %c0_i32 = arith.constant 0 : i32
    %c0_i32_0 = arith.constant 0 : i32
    %c0_i32_1 = arith.constant 0 : i32
    return %c0_i32, %c0_i32_0 : i32, i32
  }
  func.func @transform_2(%arg0: i32) -> (i32, i32) {
    %c0_i32 = arith.constant 0 : i32
    %c0_i32_0 = arith.constant 0 : i32
    %c0_i32_1 = arith.constant 0 : i32
    return %c0_i32, %c0_i32_0 : i32, i32
  }
  func.func @transform_3(%arg0: i32) -> (i32, i32) {
    %c0_i32 = arith.constant 0 : i32
    %c0_i32_0 = arith.constant 0 : i32
    %c0_i32_1 = arith.constant 0 : i32
    return %c0_i32, %c0_i32_0 : i32, i32
  }
  func.func @transform_4(%arg0: i32) -> (i32, i32) {
    %c0_i32 = arith.constant 0 : i32
    %c0_i32_0 = arith.constant 0 : i32
    %c0_i32_1 = arith.constant 0 : i32
    return %c0_i32, %c0_i32_0 : i32, i32
  }
  func.func @transform_5(%arg0: i32) -> (i32, i32) {
    %c0_i32 = arith.constant 0 : i32
    %c0_i32_0 = arith.constant 0 : i32
    %c0_i32_1 = arith.constant 0 : i32
    return %c0_i32, %c0_i32_0 : i32, i32
  }
  func.func @transform_6(%arg0: i32) -> (i32, i32) {
    %c0_i32 = arith.constant 0 : i32
    %c0_i32_0 = arith.constant 0 : i32
    %c0_i32_1 = arith.constant 0 : i32
    return %c0_i32, %c0_i32_0 : i32, i32
  }
  func.func @transform_7(%arg0: i32) -> (i32, i32) {
    %c0_i32 = arith.constant 0 : i32
    %c0_i32_0 = arith.constant 0 : i32
    return %c0_i32, %arg0 : i32, i32
  }
}

</mosaic_0001>

<bundles_post_ra>
// kernel: tpu_custom_call.1
= control target key start
LH: loop header
LB: loop body
LE: loop exit
PB: predicated region body
PF: predicated region fallthrough
CT: control target
= control target key end

     0   :  { %12 = vsyncpa [#allocation3], 0  ;;  %s575_s0 = inlined_call_operand.hbm [shape: f32[8,128], index: 0, kind: input, shape index: {}]   ;;  %s576_s1 = inlined_call_operand.hbm [shape: f32[6,8], index: 1, kind: input, shape index: {}]   ;;  %s577_s2 = inlined_call_operand.hbm [shape: f32[6,128], index: 2, kind: input, shape index: {}]   ;;  %s578_s3 = inlined_call_operand.vmem [shape: f32[4,6], index: 3, kind: input, shape index: {}]   ;;  %s579_s4 = inlined_call_operand.vmem [shape: f32[4,128], index: 4, kind: input, shape index: {}]   ;;  %s580_s5 = inlined_call_operand.vmem [shape: f32[1,4], index: 5, kind: input, shape index: {}]   ;;  %s581_s6 = inlined_call_operand.vmem [shape: f32[1,128], index: 6, kind: input, shape index: {}]   ;;  %s582_s7 = inlined_call_operand.hbm [shape: f32[1,128], index: 7, kind: output, shape index: {}]  }
   0x1   :  { %13 = vsyncpa [#allocation6], 0 }
   0x2   :  { %14 = vsyncpa [#allocation4], 0  ;;  %s469_s24 = smov [#allocation5]   ;;  %s470_s26 = smov [#allocation2]  }
   0x3   :  { %s31_s25 = sshll.u32 %s469_s24, 4  ;;  %s21_s27 = sshll.u32 %s470_s26, 4  ;;  %s32_s25 = int_to_ptr.vmem [resolvable:$true] %s31_s25  ;;  %s22_s27 = int_to_ptr.vmem [resolvable:$true] %s21_s27 }
   0x4   :  { %s375_s30 = scalar_lea.hbm %s576_s1, 128 }
   0x5   :  { %p376_p0 = scmp.ne.s32.totalorder %s576_s1, %s375_s30  ;;  %p379_p1 = scmp.lt.u32.totalorder %s375_s30, %s576_s1 }
   0x7   :  { %p381_p2 = pnand %p379_p1, %p376_p0 }
   0x9   :  { %384 = shalt.err (!%p381_p2)
}
   0xa   :  { %s385_s12 = scalar_lea.vmem %s32_s25, 128  ;;  %p390_p4 = scmp.lt.s32.totalorder %s32_s25, %s32_s25 }
   0xb   :  { %p386_p3 = scmp.ne.s32.totalorder %s32_s25, %s385_s12  ;;  %p391_p5 = scmp.lt.s32.totalorder %s385_s12, %s385_s12 }
   0xd   :  { %p392_p6 = por %p391_p5, %p390_p4 }
   0xf   :  { %p393_p7 = pnand %p392_p6, %p386_p3 }
  0x11   :  { %396 = shalt.err (!%p393_p7)
}
  0x12   :  { %34 = dma.hbm_to_vmem [thread:$0]  %s576_s1, 128, %s32_s25, [#allocation6]  }
  0x13   :  { %s397_s17 = scalar_lea.hbm %s575_s0, 128 }
  0x14   :  { %p398_p8 = scmp.ne.s32.totalorder %s575_s0, %s397_s17  ;;  %p401_p9 = scmp.lt.u32.totalorder %s397_s17, %s575_s0 }
  0x16   :  { %p403_p10 = pnand %p401_p9, %p398_p8 }
  0x18   :  { %406 = shalt.err (!%p403_p10)
}
  0x19   :  { %s407_s22 = scalar_lea.vmem %s22_s27, 128  ;;  %p412_p12 = scmp.lt.s32.totalorder %s22_s27, %s22_s27 }
  0x1a   :  { %p408_p11 = scmp.ne.s32.totalorder %s22_s27, %s407_s22  ;;  %p413_p13 = scmp.lt.s32.totalorder %s407_s22, %s407_s22 }
  0x1c   :  { %p414_p0 = por %p413_p13, %p412_p12 }
  0x1e   :  { %p415_p1 = pnand %p414_p0, %p408_p11 }
  0x20   :  { %418 = shalt.err (!%p415_p1)
}
  0x21   :  { %24 = dma.hbm_to_vmem [thread:$0]  %s575_s0, 128, %s22_s27, [#allocation3]  }
  0x22   :  { %s471_s24 = smov [#allocation7]   ;;  %s419_s29 = scalar_lea.hbm %s577_s2, 128 }
  0x23   :  { %s41_s25 = sshll.u32 %s471_s24, 4  ;;  %p420_p2 = scmp.ne.s32.totalorder %s577_s2, %s419_s29  ;;  %s42_s25 = int_to_ptr.vmem [resolvable:$true] %s41_s25 }
  0x24   :  { %p423_p3 = scmp.lt.u32.totalorder %s419_s29, %s577_s2 }
  0x26   :  { %p425_p4 = pnand %p423_p3, %p420_p2 }
  0x28   :  { %428 = shalt.err (!%p425_p4)
}
  0x29   :  { %s429_s11 = scalar_lea.vmem %s42_s25, 128  ;;  %p434_p6 = scmp.lt.s32.totalorder %s42_s25, %s42_s25 }
  0x2a   :  { %p430_p5 = scmp.ne.s32.totalorder %s42_s25, %s429_s11  ;;  %p435_p7 = scmp.lt.s32.totalorder %s429_s11, %s429_s11 }
  0x2c   :  { %p436_p8 = por %p435_p7, %p434_p6 }
  0x2e   :  { %p437_p9 = pnand %p436_p8, %p430_p5 }
  0x30   :  { %440 = shalt.err (!%p437_p9)
}
  0x31   :  { %44 = dma.hbm_to_vmem [thread:$0]  %s577_s2, 128, %s42_s25, [#allocation6]  }
  0x32   :  { %463 = dma.done.wait [#allocation3], 128  }
  0x33   :  { %464 = vsyncadd [#allocation3], 4294967168 }
  0x34   :  { %465 = dma.done.wait [#allocation6], 256  }
  0x35   :  { %466 = vsyncadd [#allocation6], 4294967040  ;;  %v472_v0 = vmov 0.0   ;;  %vm473_vm0 = vmmov 0   ;;  %vm65_vm1 = vcmask 64512   ;;  %v62_v1 = vld [vmem:[#allocation2] sm:$0xff] }
  0x36   :  { %342 = vmatprep.subr.mxu0 %v472_v0  ;;  %344 = vmatprep.mubr.msk.f32.mxu0 %vm473_vm0, %v472_v0  ;;  %v63_v2 = vld [vmem:[#allocation5] sm:$0x3f]  ;;  %v64_v3 = vld [vmem:[#allocation7] sm:$0x3f]  ;;  %vm150_vm2 = vcmask 1045504   ;;  %vm146_vm3 = vcmask 48128  }
  0x37   :  { %347 = vmatprep.subr.mxu1 %v472_v0  ;;  %349 = vmatprep.mubr.msk.f32.mxu1 %vm473_vm0, %v472_v0  ;;  %v144_v11 = vld [vmem:[%s578_s3] sm:$0xf]  ;;  %vm235_vm4 = vcmask 1043456   ;;  %vm231_vm5 = vcmask 31744   ;;  %s474_s17 = smov [#allocation8]  }
  0x38   :  { %343 = vmatpush3.msra.mxu0 %v62_v1  ;;  %v145_v13 = vld [vmem:[%s579_s4] sm:$0xf]  ;;  %s321_s18 = sshll.u32 %s474_s17, 4  ;;  %s322_s18 = int_to_ptr.vmem [resolvable:$true] %s321_s18 }
  0x39   :  { %345 = vmatmul.mubr.msk.f32.vlgmr.msra.gmra.mrb[0].mxu0 %vm65_vm1, %v63_v2  ;;  %352 = vmatprep.subr.mxu0 %v472_v0  ;;  %v229_v21 = vld [vmem:[%s580_s5] sm:$0x1]  ;;  %s441_s5 = scalar_lea.vmem %s322_s18, 16  ;;  %s445_s19 = scalar_lea.vmem %s322_s18, 32 }
  0x3a   :  { %354 = vmatprep.mubr.msk.f32.mxu0 %vm473_vm0, %v472_v0  ;;  %v230_v23 = vld [vmem:[%s581_s6] sm:$0x1]  ;;  %p442_p10 = scmp.ne.s32.totalorder %s322_s18, %s441_s5  ;;  %p446_p11 = scmp.lt.s32.totalorder %s322_s18, %s322_s18 }
  0x3b   :  { %p447_p12 = scmp.lt.s32.totalorder %s445_s19, %s441_s5 }
  0x3d   :  { %p448_p13 = por %p447_p12, %p446_p11 }
  0x3f   :  { %p449_p0 = pnand %p448_p13, %p442_p10 }
 0x10c   :  { %v135_v4 = vpop.f32.mrb[0].mxu0 }
 0x10d   :  { %v136_v5 = vadd.f32 %v135_v4, %v64_v3  ;;  %v346_v6 = vpop.f32.mrb[1].mxu0 }
 0x10f   :  { %v139_v7 = vsub.f32 0.0, %v136_v5 }
 0x111   :  { %v140_v8 = vmul.f32 1.442695, %v139_v7 }
 0x113   :  { %363 = vpow2.f32 %v140_v8 }
 0x11d   :  { %v364_v9 = vpop.eup %363 }
 0x11e   :  { %v142_v10 = vadd.f32 1.0, %v364_v9 }
 0x120   :  { %365 = vrcp.f32 %v142_v10 }
 0x12a   :  { %v366_v12 = vpop.eup %365 }
 0x12b   :  { %348 = vmatpush3.msk.msra.mxu1 %vm150_vm2, %v366_v12 }
 0x12c   :  { %350 = vmatmul.mubr.msk.f32.vlgmr.msra.gmra.mrb[0].mxu1 %vm146_vm3, %v144_v11 }
 0x1ff   :  { %v220_v14 = vpop.f32.mrb[0].mxu1 }
 0x200   :  { %v221_v15 = vadd.f32 %v220_v14, %v145_v13  ;;  %v351_v16 = vpop.f32.mrb[1].mxu1 }
 0x202   :  { %v224_v17 = vsub.f32 0.0, %v221_v15 }
 0x204   :  { %v225_v18 = vmul.f32 1.442695, %v224_v17 }
 0x206   :  { %367 = vpow2.f32 %v225_v18 }
 0x210   :  { %v368_v19 = vpop.eup %367 }
 0x211   :  { %v227_v20 = vadd.f32 1.0, %v368_v19 }
 0x213   :  { %369 = vrcp.f32 %v227_v20 }
 0x21d   :  { %v370_v22 = vpop.eup %369 }
 0x21e   :  { %353 = vmatpush3.msk.msra.mxu0 %vm235_vm4, %v370_v22 }
 0x21f   :  { %355 = vmatmul.mubr.msk.f32.vlgmr.msra.gmra.mrb[2].mxu0 %vm231_vm5, %v229_v21 }
 0x2f2   :  { %v305_v24 = vpop.f32.mrb[2].mxu0 }
 0x2f3   :  { %v306_v25 = vadd.f32 %v305_v24, %v230_v23  ;;  %v356_v26 = vpop.f32.mrb[3].mxu0 }
 0x2f5   :  { %v309_v27 = vsub.f32 0.0, %v306_v25 }
 0x2f7   :  { %v310_v28 = vmul.f32 1.442695, %v309_v27 }
 0x2f9   :  { %371 = vpow2.f32 %v310_v28 }
 0x303   :  { %v372_v29 = vpop.eup %371 }
 0x304   :  { %v312_v30 = vadd.f32 1.0, %v372_v29 }
 0x306   :  { %373 = vrcp.f32 %v312_v30 }
 0x310   :  { %v374_v31 = vpop.eup %373 }
 0x311   :  { %314 = vst [vmem:[#allocation8] sm:$0x1] %v374_v31 }
 0x312   :  { %452 = shalt.err (!%p449_p0)
}
 0x313   :  { %s453_s21 = scalar_lea.hbm %s582_s7, 16 }
 0x314   :  { %p454_p1 = scmp.ne.s32.totalorder %s582_s7, %s453_s21  ;;  %p457_p2 = scmp.lt.u32.totalorder %s453_s21, %s582_s7 }
 0x316   :  { %p459_p3 = pnand %p457_p2, %p454_p1 }
 0x318   :  { %462 = shalt.err (!%p459_p3)
}
 0x319   :  { %324 = dma.vmem_to_hbm [thread:$0]  %s322_s18, 16, %s582_s7, [#allocation4]  }
 0x31a   :  { %467 = dma.done.wait [#allocation4], 16  }
 0x31b   :  { %468 = vsyncadd [#allocation4], 4294967280 }
 0x31c   :  { %328 = vsyncpa [#allocation3], 1 }
 0x31d   :  { %329 = vsyncpa [#allocation6], 1 }
 0x31e   :  { %330 = vsyncpa [#allocation4], 1 }

</bundles_post_ra>
